<compile_context>
chip_gen: v6e
topology: v6e:2x2x1
jax: 0.10.0
libtpu: 0.0.40
codegen_flags: <defaults>
</compile_context>

<pallas_src>
import functools

import jax
import jax.numpy as jnp
from jax.experimental import pallas as pl
from jax.experimental.pallas import tpu as pltpu


NEG_SLOPE = 0.2     # PyG GATConv default leaky_relu negative slope
NEG_INF = -1e30     # mask value; exp(NEG_INF - m) underflows cleanly to 0 in f32
LANE = 128
SUBLANE = 8


def _round_up(v, m):
    return (v + m - 1) // m * m


def _build_att_matrix(att_src, att_dst):
    """Block-diagonal [H*F, 2H] matrix so that h @ mat yields all per-head source
    scores (cols 0..H-1) and destination scores (cols H..2H-1) in ONE MXU matmul
    instead of 2*H cross-lane (XLU) reductions."""
    heads, f = att_src.shape
    mat = jnp.zeros((heads * f, 2 * heads), jnp.float32)
    for hd in range(heads):
        mat = mat.at[hd * f:(hd + 1) * f, hd].set(att_src[hd])
        mat = mat.at[hd * f:(hd + 1) * f, heads + hd].set(att_dst[hd])
    return mat


def _gat_conv(h_in, w, att_mat, bias, mask3, heads, concat):
    """One dense GATConv on VMEM-resident values (traced inside the fused kernel)."""
    # Shared linear transform (MXU).
    h = jnp.dot(h_in, w, preferred_element_type=jnp.float32)             # [N, H*F]
    f = h.shape[-1] // heads

    # All per-head src/dst attention scores in a single MXU matmul.
    scores = jnp.dot(h, att_mat, preferred_element_type=jnp.float32)     # [N, 2H]
    s_t = scores.T                                                        # [2H, N]
    a_src = s_t[:heads]                                                   # [H, N]
    a_dst = s_t[heads:]                                                   # [H, N]

    # Batched over heads: e[h, i, j] = leaky_relu(a_dst[h, i] + a_src[h, j]).
    e = a_dst[:, :, None] + a_src[:, None, :]                             # [H, N, N]
    e = jnp.where(e > 0, e, NEG_SLOPE * e)
    e = jnp.where(mask3, e, NEG_INF)

    # Per-destination softmax over source nodes, batched over heads.
    m = jnp.max(e, axis=-1, keepdims=True)
    p = jnp.exp(e - m)
    p = jnp.where(mask3, p, 0.0)
    denom = jnp.sum(p, axis=-1, keepdims=True)
    denom = jnp.maximum(denom, 1e-20)         # guard rows with no edges (padding)
    inv = pl.reciprocal(denom, approx=True)    # EUP slot (nearly free)
    inv = inv * (2.0 - denom * inv)            # one Newton step -> full f32 accuracy
    alpha = p * inv                                                       # [H, N, N]

    if heads == 1:
        out = jnp.dot(alpha[0], h, preferred_element_type=jnp.float32)    # [N, F]
    else:
        h_heads = jnp.stack(
            [h[:, hd * f:(hd + 1) * f] for hd in range(heads)], axis=0)   # [H, N, F]
        out_heads = jnp.einsum('hij,hjf->hif', alpha, h_heads,
                               preferred_element_type=jnp.float32)        # [H, N, F]
        if concat:
            out = jnp.concatenate([out_heads[hd] for hd in range(heads)], axis=-1)
        else:
            out = sum(out_heads[hd] for hd in range(heads)) * (1.0 / heads)
    return out + bias                          # bias is [1, D]; broadcasts over rows


def gat_fused_kernel(x_ref, adj_ref, w1_ref, att1_ref, b1_ref,
                     w2_ref, att2_ref, b2_ref, out_ref, *, heads1, heads2):
    # Adjacency mask computed ONCE (int8 -> f32 -> bool) and reused by both layers.
    mask = adj_ref[...].astype(jnp.float32) > 0.0                         # [N, N]
    mask3 = mask[None, :, :]                                              # [1, N, N]

    # ---- layer 1: GATConv(heads=H, concat=True) + fused ELU -------------------
    h1 = _gat_conv(x_ref[...], w1_ref[...], att1_ref[...], b1_ref[...],
                   mask3, heads1, concat=True)                            # [N, H*F1]
    # ELU; clamp so the untaken exp branch never produces inf (expm1-equivalent).
    h1 = jnp.where(h1 > 0, h1, jnp.exp(jnp.minimum(h1, 0.0)) - 1.0)

    # ---- layer 2: GATConv(heads=1, concat=False) ------------------------------
    out = _gat_conv(h1, w2_ref[...], att2_ref[...], b2_ref[...],
                    mask3, heads2, concat=False)                          # [N, F2p]
    out_ref[...] = out.astype(out_ref.dtype)


def gat_model_forward(params, x, adj):
    """Dense 2-layer GAT forward.  adj[dst, src] != 0 where edge src->dst exists
    (self-loops included, as PyG GATConv adds them by default)."""
    n, _ = x.shape
    heads = params["heads"]
    f_out = params["output_dim"]

    n_pad = _round_up(n, SUBLANE)
    f2_pad = _round_up(f_out, LANE)        # lane-dense HBM store for the output

    x_p = jnp.pad(x, ((0, n_pad - n), (0, 0)))
    adj_i8 = jnp.pad((adj != 0).astype(jnp.int8),
                     ((0, n_pad - n), (0, n_pad - n)))

    att1 = _build_att_matrix(params["asrc1"], params["adst1"])            # [H*F1, 2H]
    b1 = params["b1"].reshape(1, -1)

    w2_p = jnp.pad(params["w2"], ((0, 0), (0, f2_pad - f_out)))           # [H*F1, F2p]
    b2_p = jnp.pad(params["b2"], (0, f2_pad - f_out)).reshape(1, -1)
    asrc2_p = jnp.pad(params["asrc2"], ((0, 0), (0, f2_pad - f_out)))
    adst2_p = jnp.pad(params["adst2"], ((0, 0), (0, f2_pad - f_out)))
    att2 = _build_att_matrix(asrc2_p, adst2_p)                            # [F2p, 2]

    kernel = functools.partial(gat_fused_kernel, heads1=heads, heads2=1)
    vmem = pl.BlockSpec(memory_space=pltpu.MemorySpace.VMEM)

    out = pl.pallas_call(
        kernel,
        out_shape=jax.ShapeDtypeStruct((n_pad, f2_pad), jnp.float32),
        in_specs=[vmem] * 8,
        out_specs=vmem,
        compiler_params=pltpu.CompilerParams(vmem_limit_bytes=32 * 1024 * 1024),
    )(x_p, adj_i8, params["w1"], att1, b1, w2_p, att2, b2_p)
    return out[:n, :f_out]


def reference_forward(params, x, adj):
    """Pure-JAX dense reference with identical math (for sanity check)."""
    def layer(x, w, asrc, adst, bias, heads, fout, concat, elu):
        h = x @ w
        outs = []
        for hd in range(heads):
            hh = h[:, hd * fout:(hd + 1) * fout]
            a_s = jnp.sum(hh * asrc[hd], axis=-1)
            a_d = jnp.sum(hh * adst[hd], axis=-1)
            e = a_d[:, None] + a_s[None, :]
            e = jnp.where(e > 0, e, NEG_SLOPE * e)
            e = jnp.where(adj > 0, e, NEG_INF)
            p = jax.nn.softmax(e, axis=-1)
            p = jnp.where(adj > 0, p, 0.0)
            p = p / jnp.sum(p, axis=-1, keepdims=True)
            outs.append(p @ hh)
        out = jnp.concatenate(outs, -1) if concat else sum(outs) / heads
        out = out + bias
        if elu:
            out = jnp.where(out > 0, out, jnp.exp(jnp.minimum(out, 0.0)) - 1.0)
        return out

    h = layer(x, params["w1"], params["asrc1"], params["adst1"], params["b1"],
              params["heads"], params["hidden_dim"], True, True)
    return layer(h, params["w2"], params["asrc2"], params["adst2"], params["b2"],
                 1, params["output_dim"], False, False)


def make_params(key, input_dim, hidden_dim, output_dim, heads):
    ks = jax.random.split(key, 8)
    scale = 0.2
    return {
        "heads": heads,
        "hidden_dim": hidden_dim,
        "output_dim": output_dim,
        "w1": scale * jax.random.normal(ks[0], (input_dim, heads * hidden_dim), jnp.float32),
        "asrc1": scale * jax.random.normal(ks[1], (heads, hidden_dim), jnp.float32),
        "adst1": scale * jax.random.normal(ks[2], (heads, hidden_dim), jnp.float32),
        "b1": jnp.zeros((heads * hidden_dim,), jnp.float32),
        "w2": scale * jax.random.normal(ks[3], (heads * hidden_dim, output_dim), jnp.float32),
        "asrc2": scale * jax.random.normal(ks[4], (1, output_dim), jnp.float32),
        "adst2": scale * jax.random.normal(ks[5], (1, output_dim), jnp.float32),
        "b2": jnp.zeros((output_dim,), jnp.float32),
    }


if __name__ == "__main__":
    key = jax.random.PRNGKey(0)
    k_x, k_src, k_dst, k_p = jax.random.split(key, 4)

    # Small synthetic graph: N nodes, E directed edges (+ self-loops, as PyG GATConv adds).
    N, E = 16, 40
    input_dim, hidden_dim, output_dim, heads = 8, 8, 4, 4

    x = jax.random.normal(k_x, (N, input_dim), jnp.float32)
    src = jax.random.randint(k_src, (E,), 0, N)
    dst = jax.random.randint(k_dst, (E,), 0, N)

    # Dense adjacency mask adj[dst, src] = 1.0; add self-loops (GATConv default).
    adj = jnp.zeros((N, N), jnp.float32).at[dst, src].set(1.0)
    adj = adj.at[jnp.arange(N), jnp.arange(N)].set(1.0)

    params = make_params(k_p, input_dim, hidden_dim, output_dim, heads)

    out = gat_model_forward(params, x, adj)
    out = jax.block_until_ready(out)

    ref = reference_forward(params, x, adj)
    assert out.shape == (N, output_dim)
    assert jnp.allclose(out, ref, atol=1e-3, rtol=1e-3)

    print("KERNEL_OK")
</pallas_src>

<mosaic_0001>
module attributes {stable_mosaic.version = 11 : i64} {
  func.func @gat_fused_kernel(%arg0: memref<16x8xf32, #tpu.memory_space<vmem>>, %arg1: memref<16x16xi8, #tpu.memory_space<vmem>>, %arg2: memref<8x32xf32, #tpu.memory_space<vmem>>, %arg3: memref<32x8xf32, #tpu.memory_space<vmem>>, %arg4: memref<1x32xf32, #tpu.memory_space<vmem>>, %arg5: memref<32x128xf32, #tpu.memory_space<vmem>>, %arg6: memref<128x2xf32, #tpu.memory_space<vmem>>, %arg7: memref<1x128xf32, #tpu.memory_space<vmem>>, %arg8: memref<16x128xf32, #tpu.memory_space<vmem>>) attributes {dimension_semantics = [], scalar_prefetch = 0 : i64, scratch_operands = 0 : i64, tpu.core_type = #tpu.core_type<tc>} {
    %c0 = arith.constant 0 : index
    %c0_0 = arith.constant 0 : index
    %0 = vector.load %arg1[%c0, %c0_0] : memref<16x16xi8, #tpu.memory_space<vmem>>, vector<16x16xi8>
    %1 = arith.sitofp %0 : vector<16x16xi8> to vector<16x16xf32>
    %cst = arith.constant 0.000000e+00 : f32
    %2 = vector.broadcast %cst : f32 to vector<16x16xf32>
    %3 = arith.cmpf ogt, %1, %2 : vector<16x16xf32>
    %4 = vector.shape_cast %3 : vector<16x16xi1> to vector<1x16x16xi1>
    %c0_1 = arith.constant 0 : index
    %c0_2 = arith.constant 0 : index
    %5 = vector.load %arg0[%c0_1, %c0_2] : memref<16x8xf32, #tpu.memory_space<vmem>>, vector<16x8xf32>
    %c0_3 = arith.constant 0 : index
    %c0_4 = arith.constant 0 : index
    %6 = vector.load %arg2[%c0_3, %c0_4] : memref<8x32xf32, #tpu.memory_space<vmem>>, vector<8x32xf32>
    %c0_5 = arith.constant 0 : index
    %c0_6 = arith.constant 0 : index
    %7 = vector.load %arg3[%c0_5, %c0_6] : memref<32x8xf32, #tpu.memory_space<vmem>>, vector<32x8xf32>
    %c0_7 = arith.constant 0 : index
    %c0_8 = arith.constant 0 : index
    %8 = vector.load %arg4[%c0_7, %c0_8] : memref<1x32xf32, #tpu.memory_space<vmem>>, vector<1x32xf32>
    %cst_9 = arith.constant dense<0.000000e+00> : vector<16x32xf32>
    %9 = tpu.matmul %5, %6, %cst_9 {dimension_numbers = #tpu.dot_dimension_numbers<[1], [0], [0], [1], [0, 0, 1, 1], [], []>} : vector<16x8xf32>, vector<8x32xf32>, vector<16x32xf32> -> vector<16x32xf32>
    %cst_10 = arith.constant dense<0.000000e+00> : vector<16x8xf32>
    %10 = tpu.matmul %9, %7, %cst_10 {dimension_numbers = #tpu.dot_dimension_numbers<[1], [0], [0], [1], [0, 0, 1, 1], [], []>} : vector<16x32xf32>, vector<32x8xf32>, vector<16x8xf32> -> vector<16x8xf32>
    %11 = tpu.transpose %10, [1, 0] : vector<16x8xf32> -> vector<8x16xf32>
    %12 = vector.extract_strided_slice %11 {offsets = [0, 0], sizes = [4, 16], strides = [1, 1]} : vector<8x16xf32> to vector<4x16xf32>
    %13 = vector.extract_strided_slice %11 {offsets = [4, 0], sizes = [4, 16], strides = [1, 1]} : vector<8x16xf32> to vector<4x16xf32>
    %14 = vector.shape_cast %13 : vector<4x16xf32> to vector<4x16x1xf32>
    %15 = vector.shape_cast %12 : vector<4x16xf32> to vector<4x1x16xf32>
    %16 = vector.broadcast %14 : vector<4x16x1xf32> to vector<4x16x16xf32>
    %17 = vector.broadcast %15 : vector<4x1x16xf32> to vector<4x16x16xf32>
    %18 = arith.addf %16, %17 : vector<4x16x16xf32>
    %cst_11 = arith.constant 0.000000e+00 : f32
    %19 = vector.broadcast %cst_11 : f32 to vector<4x16x16xf32>
    %20 = arith.cmpf ogt, %18, %19 : vector<4x16x16xf32>
    %cst_12 = arith.constant 2.000000e-01 : f32
    %21 = vector.broadcast %cst_12 : f32 to vector<4x16x16xf32>
    %22 = arith.mulf %21, %18 : vector<4x16x16xf32>
    %23 = arith.select %20, %18, %22 : vector<4x16x16xi1>, vector<4x16x16xf32>
    %cst_13 = arith.constant -1.000000e+30 : f32
    %24 = vector.shape_cast %4 : vector<1x16x16xi1> to vector<1x16x16xi1>
    %25 = vector.broadcast %24 : vector<1x16x16xi1> to vector<4x16x16xi1>
    %26 = vector.broadcast %cst_13 : f32 to vector<4x16x16xf32>
    %27 = arith.select %25, %23, %26 : vector<4x16x16xi1>, vector<4x16x16xf32>
    %cst_14 = arith.constant dense<0xFF800000> : vector<4x16xf32>
    %28 = vector.multi_reduction <maximumf>, %27, %cst_14 [2] : vector<4x16x16xf32> to vector<4x16xf32>
    %29 = vector.shape_cast %28 : vector<4x16xf32> to vector<4x16x1xf32>
    %30 = vector.broadcast %29 : vector<4x16x1xf32> to vector<4x16x16xf32>
    %31 = arith.subf %27, %30 : vector<4x16x16xf32>
    %32 = math.exp %31 : vector<4x16x16xf32>
    %cst_15 = arith.constant 0.000000e+00 : f32
    %33 = vector.shape_cast %4 : vector<1x16x16xi1> to vector<1x16x16xi1>
    %34 = vector.broadcast %33 : vector<1x16x16xi1> to vector<4x16x16xi1>
    %35 = vector.broadcast %cst_15 : f32 to vector<4x16x16xf32>
    %36 = arith.select %34, %32, %35 : vector<4x16x16xi1>, vector<4x16x16xf32>
    %cst_16 = arith.constant dense<0.000000e+00> : vector<4x16xf32>
    %37 = vector.multi_reduction <add>, %36, %cst_16 [2] : vector<4x16x16xf32> to vector<4x16xf32>
    %38 = vector.shape_cast %37 : vector<4x16xf32> to vector<4x16x1xf32>
    %cst_17 = arith.constant 9.99999968E-21 : f32
    %39 = vector.broadcast %cst_17 : f32 to vector<4x16x1xf32>
    %40 = arith.maximumf %38, %39 : vector<4x16x1xf32>
    %41 = tpu.reciprocal %40 {approx = true} : vector<4x16x1xf32> -> vector<4x16x1xf32>
    %42 = arith.mulf %40, %41 : vector<4x16x1xf32>
    %cst_18 = arith.constant 2.000000e+00 : f32
    %43 = vector.broadcast %cst_18 : f32 to vector<4x16x1xf32>
    %44 = arith.subf %43, %42 : vector<4x16x1xf32>
    %45 = arith.mulf %41, %44 : vector<4x16x1xf32>
    %46 = vector.broadcast %45 : vector<4x16x1xf32> to vector<4x16x16xf32>
    %47 = arith.mulf %36, %46 : vector<4x16x16xf32>
    %48 = vector.extract_strided_slice %9 {offsets = [0, 0], sizes = [16, 8], strides = [1, 1]} : vector<16x32xf32> to vector<16x8xf32>
    %49 = vector.extract_strided_slice %9 {offsets = [0, 8], sizes = [16, 8], strides = [1, 1]} : vector<16x32xf32> to vector<16x8xf32>
    %50 = vector.extract_strided_slice %9 {offsets = [0, 16], sizes = [16, 8], strides = [1, 1]} : vector<16x32xf32> to vector<16x8xf32>
    %51 = vector.extract_strided_slice %9 {offsets = [0, 24], sizes = [16, 8], strides = [1, 1]} : vector<16x32xf32> to vector<16x8xf32>
    %52 = vector.shape_cast %48 : vector<16x8xf32> to vector<1x16x8xf32>
    %53 = vector.shape_cast %49 : vector<16x8xf32> to vector<1x16x8xf32>
    %54 = vector.shape_cast %50 : vector<16x8xf32> to vector<1x16x8xf32>
    %55 = vector.shape_cast %51 : vector<16x8xf32> to vector<1x16x8xf32>
    %56 = tpu.concatenate %52, %53, %54, %55 in 0 : vector<1x16x8xf32>, vector<1x16x8xf32>, vector<1x16x8xf32>, vector<1x16x8xf32> -> vector<4x16x8xf32>
    "tpu.trace_start"() <{level = 10 : i32, message = "hij,hjf->hif"}> : () -> ()
    %cst_19 = arith.constant dense<0.000000e+00> : vector<4x16x8xf32>
    %57 = tpu.matmul %47, %56, %cst_19 {dimension_numbers = #tpu.dot_dimension_numbers<[2], [1], [1], [2], [0, 0, 0, 1, 1, 2], [0], [0]>} : vector<4x16x16xf32>, vector<4x16x8xf32>, vector<4x16x8xf32> -> vector<4x16x8xf32>
    "tpu.trace_stop"() : () -> ()
    %58 = vector.extract_strided_slice %57 {offsets = [0, 0, 0], sizes = [1, 16, 8], strides = [1, 1, 1]} : vector<4x16x8xf32> to vector<1x16x8xf32>
    %59 = vector.shape_cast %58 : vector<1x16x8xf32> to vector<16x8xf32>
    %60 = vector.extract_strided_slice %57 {offsets = [1, 0, 0], sizes = [1, 16, 8], strides = [1, 1, 1]} : vector<4x16x8xf32> to vector<1x16x8xf32>
    %61 = vector.shape_cast %60 : vector<1x16x8xf32> to vector<16x8xf32>
    %62 = vector.extract_strided_slice %57 {offsets = [2, 0, 0], sizes = [1, 16, 8], strides = [1, 1, 1]} : vector<4x16x8xf32> to vector<1x16x8xf32>
    %63 = vector.shape_cast %62 : vector<1x16x8xf32> to vector<16x8xf32>
    %64 = vector.extract_strided_slice %57 {offsets = [3, 0, 0], sizes = [1, 16, 8], strides = [1, 1, 1]} : vector<4x16x8xf32> to vector<1x16x8xf32>
    %65 = vector.shape_cast %64 : vector<1x16x8xf32> to vector<16x8xf32>
    %66 = tpu.concatenate %59, %61, %63, %65 in 1 : vector<16x8xf32>, vector<16x8xf32>, vector<16x8xf32>, vector<16x8xf32> -> vector<16x32xf32>
    %67 = vector.broadcast %8 : vector<1x32xf32> to vector<16x32xf32>
    %68 = arith.addf %66, %67 : vector<16x32xf32>
    %cst_20 = arith.constant 0.000000e+00 : f32
    %69 = vector.broadcast %cst_20 : f32 to vector<16x32xf32>
    %70 = arith.cmpf ogt, %68, %69 : vector<16x32xf32>
    %cst_21 = arith.constant 0.000000e+00 : f32
    %71 = vector.broadcast %cst_21 : f32 to vector<16x32xf32>
    %72 = arith.minimumf %68, %71 : vector<16x32xf32>
    %73 = math.exp %72 : vector<16x32xf32>
    %cst_22 = arith.constant 1.000000e+00 : f32
    %74 = vector.broadcast %cst_22 : f32 to vector<16x32xf32>
    %75 = arith.subf %73, %74 : vector<16x32xf32>
    %76 = arith.select %70, %68, %75 : vector<16x32xi1>, vector<16x32xf32>
    %c0_23 = arith.constant 0 : index
    %c0_24 = arith.constant 0 : index
    %77 = vector.load %arg5[%c0_23, %c0_24] : memref<32x128xf32, #tpu.memory_space<vmem>>, vector<32x128xf32>
    %c0_25 = arith.constant 0 : index
    %c0_26 = arith.constant 0 : index
    %78 = vector.load %arg6[%c0_25, %c0_26] : memref<128x2xf32, #tpu.memory_space<vmem>>, vector<128x2xf32>
    %c0_27 = arith.constant 0 : index
    %c0_28 = arith.constant 0 : index
    %79 = vector.load %arg7[%c0_27, %c0_28] : memref<1x128xf32, #tpu.memory_space<vmem>>, vector<1x128xf32>
    %cst_29 = arith.constant dense<0.000000e+00> : vector<16x128xf32>
    %80 = tpu.matmul %76, %77, %cst_29 {dimension_numbers = #tpu.dot_dimension_numbers<[1], [0], [0], [1], [0, 0, 1, 1], [], []>} : vector<16x32xf32>, vector<32x128xf32>, vector<16x128xf32> -> vector<16x128xf32>
    %cst_30 = arith.constant dense<0.000000e+00> : vector<16x2xf32>
    %81 = tpu.matmul %80, %78, %cst_30 {dimension_numbers = #tpu.dot_dimension_numbers<[1], [0], [0], [1], [0, 0, 1, 1], [], []>} : vector<16x128xf32>, vector<128x2xf32>, vector<16x2xf32> -> vector<16x2xf32>
    %82 = tpu.transpose %81, [1, 0] : vector<16x2xf32> -> vector<2x16xf32>
    %83 = vector.extract_strided_slice %82 {offsets = [0, 0], sizes = [1, 16], strides = [1, 1]} : vector<2x16xf32> to vector<1x16xf32>
    %84 = vector.extract_strided_slice %82 {offsets = [1, 0], sizes = [1, 16], strides = [1, 1]} : vector<2x16xf32> to vector<1x16xf32>
    %85 = vector.shape_cast %84 : vector<1x16xf32> to vector<1x16x1xf32>
    %86 = vector.shape_cast %83 : vector<1x16xf32> to vector<1x1x16xf32>
    %87 = vector.broadcast %85 : vector<1x16x1xf32> to vector<1x16x16xf32>
    %88 = vector.broadcast %86 : vector<1x1x16xf32> to vector<1x16x16xf32>
    %89 = arith.addf %87, %88 : vector<1x16x16xf32>
    %cst_31 = arith.constant 0.000000e+00 : f32
    %90 = vector.broadcast %cst_31 : f32 to vector<1x16x16xf32>
    %91 = arith.cmpf ogt, %89, %90 : vector<1x16x16xf32>
    %cst_32 = arith.constant 2.000000e-01 : f32
    %92 = vector.broadcast %cst_32 : f32 to vector<1x16x16xf32>
    %93 = arith.mulf %92, %89 : vector<1x16x16xf32>
    %94 = arith.select %91, %89, %93 : vector<1x16x16xi1>, vector<1x16x16xf32>
    %cst_33 = arith.constant -1.000000e+30 : f32
    %95 = vector.broadcast %cst_33 : f32 to vector<1x16x16xf32>
    %96 = arith.select %4, %94, %95 : vector<1x16x16xi1>, vector<1x16x16xf32>
    %cst_34 = arith.constant dense<0xFF800000> : vector<1x16xf32>
    %97 = vector.multi_reduction <maximumf>, %96, %cst_34 [2] : vector<1x16x16xf32> to vector<1x16xf32>
    %98 = vector.shape_cast %97 : vector<1x16xf32> to vector<1x16x1xf32>
    %99 = vector.broadcast %98 : vector<1x16x1xf32> to vector<1x16x16xf32>
    %100 = arith.subf %96, %99 : vector<1x16x16xf32>
    %101 = math.exp %100 : vector<1x16x16xf32>
    %cst_35 = arith.constant 0.000000e+00 : f32
    %102 = vector.broadcast %cst_35 : f32 to vector<1x16x16xf32>
    %103 = arith.select %4, %101, %102 : vector<1x16x16xi1>, vector<1x16x16xf32>
    %cst_36 = arith.constant dense<0.000000e+00> : vector<1x16xf32>
    %104 = vector.multi_reduction <add>, %103, %cst_36 [2] : vector<1x16x16xf32> to vector<1x16xf32>
    %105 = vector.shape_cast %104 : vector<1x16xf32> to vector<1x16x1xf32>
    %cst_37 = arith.constant 9.99999968E-21 : f32
    %106 = vector.broadcast %cst_37 : f32 to vector<1x16x1xf32>
    %107 = arith.maximumf %105, %106 : vector<1x16x1xf32>
    %108 = tpu.reciprocal %107 {approx = true} : vector<1x16x1xf32> -> vector<1x16x1xf32>
    %109 = arith.mulf %107, %108 : vector<1x16x1xf32>
    %cst_38 = arith.constant 2.000000e+00 : f32
    %110 = vector.broadcast %cst_38 : f32 to vector<1x16x1xf32>
    %111 = arith.subf %110, %109 : vector<1x16x1xf32>
    %112 = arith.mulf %108, %111 : vector<1x16x1xf32>
    %113 = vector.broadcast %112 : vector<1x16x1xf32> to vector<1x16x16xf32>
    %114 = arith.mulf %103, %113 : vector<1x16x16xf32>
    %115 = vector.shape_cast %114 : vector<1x16x16xf32> to vector<16x16xf32>
    %cst_39 = arith.constant dense<0.000000e+00> : vector<16x128xf32>
    %116 = tpu.matmul %115, %80, %cst_39 {dimension_numbers = #tpu.dot_dimension_numbers<[1], [0], [0], [1], [0, 0, 1, 1], [], []>} : vector<16x16xf32>, vector<16x128xf32>, vector<16x128xf32> -> vector<16x128xf32>
    %117 = vector.broadcast %79 : vector<1x128xf32> to vector<16x128xf32>
    %118 = arith.addf %116, %117 : vector<16x128xf32>
    %c0_40 = arith.constant 0 : index
    %c0_41 = arith.constant 0 : index
    %119 = vector.load %arg8[%c0_40, %c0_41] : memref<16x128xf32, #tpu.memory_space<vmem>>, vector<16x128xf32>
    tpu.vector_store %arg8[%c0_40, %c0_41], %118 {strides = array<i32>} : memref<16x128xf32, #tpu.memory_space<vmem>>, vector<16x128xf32>,
    return
  }
}

</mosaic_0001>

<bundles_post_ra>
// kernel: tpu_custom_call.1
= control target key start
LH: loop header
LB: loop body
LE: loop exit
PB: predicated region body
PF: predicated region fallthrough
CT: control target
= control target key end

     0   :  { %vm46_vm0 = vcmask 64512   ;;  %s1828_s0 = inlined_call_operand.vmem [shape: f32[16,8], index: 0, kind: input, shape index: {}]   ;;  %s1829_s1 = inlined_call_operand.vmem [shape: s8[16,16], index: 1, kind: input, shape index: {}]   ;;  %s1830_s2 = inlined_call_operand.vmem [shape: f32[8,32], index: 2, kind: input, shape index: {}]   ;;  %s1831_s3 = inlined_call_operand.vmem [shape: f32[32,8], index: 3, kind: input, shape index: {}]   ;;  %s1832_s4 = inlined_call_operand.vmem [shape: f32[1,32], index: 4, kind: input, shape index: {}]   ;;  %s1833_s5 = inlined_call_operand.vmem [shape: f32[32,128], index: 5, kind: input, shape index: {}]   ;;  %s1834_s6 = inlined_call_operand.vmem [shape: f32[128,2], index: 6, kind: input, shape index: {}]   ;;  %s1835_s7 = inlined_call_operand.vmem [shape: f32[1,128], index: 7, kind: input, shape index: {}]   ;;  %s1836_s8 = inlined_call_operand.hbm [shape: f32[16,128], index: 8, kind: output, shape index: {}]  }
   0x1   :  { %v40_v0 = vld [vmem:[%s1830_s2] sm:$0xff]  ;;  %v39_v2 = vld [vmem:[%s1828_s0 + $0x8] sm:$0xff]  ;;  %v44_v3 = vld [vmem:[%s1831_s3 + $0x18] sm:$0xff] }
   0x2   :  { %v38_v1 = vld [vmem:[%s1828_s0] sm:$0xff]  ;;  %1345 = vmatprep.subr.mxu1 %v40_v0  ;;  %v43_v4 = vld [vmem:[%s1831_s3 + $0x10] sm:$0xff] }
   0x3   :  { %1347 = vmatprep.mubr.msk.f32.mxu1 %vm46_vm0, %v38_v1  ;;  %1346 = vmatpush3.msra.mxu1 %v40_v0 }
   0x4   :  { %13 = vsyncpa [#allocation3], 0  ;;  %1348 = vmatmul.mubr.msk.f32.vlgmr.msra.gmra.mxu1 %vm46_vm0, %v39_v2  ;;  %1350 = vmatprep.subr.mxu1 %v44_v3  ;;  %v42_v5 = vld [vmem:[%s1831_s3 + $0x8] sm:$0xff]  ;;  %v41_v6 = vld [vmem:[%s1831_s3] sm:$0xff]  ;;  %vm128_vm1 = vcmask 261120   ;;  %v242_v11 = vlaneseq  ;;  %vm375_vm5 = vcmask 130048  }
   0x5   :  { %1351 = vmatpush3.msra.mxu1 %v44_v3  ;;  %v1518_v22 = vmov 1966171168   ;;  %v1289_v28 = vld [vmem:[%s1829_s1] sm:$0xf]   ;;  %s1519_s1 = smov 120   ;;  %s1520_s18 = smov 112  }
   0x6   :  { %1352 = vmatprep.subr.mxu1 %v43_v4  ;;  %v1607_v12 = vshrl.u32 %v242_v11, 7  ;;  %v288_v23 = vunpack.c.l.s4 %v1518_v22  ;;  %v1290_v29 = vunpack.c.0.s8 %v1289_v28  ;;  %v1291_v34 = vunpack.c.1.s8 %v1289_v28  ;;  %s1521_s19 = smov 104   ;;  %s1522_s20 = smov 8  }
   0x7   :  { %1353 = vmatpush3.msra.mxu1 %v43_v4  ;;  %s1523_s21 = smov 16   ;;  %s1524_s28 = smov 24   ;;  %vm874_vm13 = vcmask 195584  }
   0x8   :  { %1354 = vmatprep.subr.mxu1 %v42_v5  ;;  %v255_v13 = vsub.s32 5, %v1607_v12  ;;  %v244_v14 = vsub.s32 4, %v1607_v12  ;;  %v266_v18 = vsub.s32 6, %v1607_v12  ;;  %v277_v20 = vsub.s32 7, %v1607_v12  ;;  %s1525_s15 = smov [#allocation2]  }
   0x9   :  { %1355 = vmatpush3.msra.mxu1 %v42_v5  ;;  %v289_v24 = vunpack.c.0.s8 %v288_v23  ;;  %v1618_v31 = vsub.s32 0, %v1607_v12  ;;  %v1620_v33 = vcvt.s32.f32 %v1290_v29  ;;  %v1625_v41 = vcvt.s32.f32 %v1291_v34  ;;  %s1257_s0 = sshll.u32 %s1525_s15, 4  ;;  %s1258_s0 = int_to_ptr.vmem [resolvable:$true] %s1257_s0 }
   0xa   :  { %1356 = vmatprep.subr.mxu1 %v41_v6  ;;  %s1496_s16 = scalar_lea.vmem %s1258_s0, 256  ;;  %p1501_p1 = scmp.lt.s32.totalorder %s1258_s0, %s1258_s0 }
   0xb   :  { %1357 = vmatpush3.msra.mxu1 %v41_v6  ;;  %v292_v25 = vsub.s32 %v289_v24, %v1607_v12  ;;  %vm36_vm2 = vcmp.gt.f32.partialorder %v1620_v33, 0.0  ;;  %vm37_vm6 = vcmp.gt.f32.partialorder %v1625_v41, 0.0  ;;  %p1497_p0 = scmp.ne.s32.totalorder %s1258_s0, %s1496_s16  ;;  %p1502_p2 = scmp.lt.s32.totalorder %s1496_s16, %s1496_s16 }
   0xd   :  { %p1503_p3 = por %p1502_p2, %p1501_p1 }
   0xf   :  { %p1504_p4 = pnand %p1503_p3, %p1497_p0 }
  0xc4   :  { %v1595_v7 = vpop.f32.mrf.mxu1 }
  0xc5   :  { %1361 = vmatprep.subr.mxu1 %v1595_v7 }
  0xc6   :  { %v1598_v8 = vpop.f32.mrf.mxu1 }
  0xc7   :  { %1358 = vmatprep.mubr.msk.f32.mxu1 %vm128_vm1, %v1598_v8 }
  0xc8   :  { %1359 = vmatmul.mubr.msk.f32.vlgmr.msra.gmra.mxu1 %vm128_vm1, %v1595_v7 }
  0xc9   :  { %1362 = vmatpush3.msra.mxu1 %v1595_v7 }
  0xca   :  { %1363 = vmatprep.subr.mxu1 %v1598_v8 }
  0xcb   :  { %1364 = vmatpush3.msra.mxu1 %v1598_v8 }
 0x188   :  { %v1360_v9 = vpop.f32.mrf.mxu1 }
 0x18a   :  { %v201_v10 = vpop.f32.mrf.mxu1 }
 0x18b   :  { %210 = vxpose.xlu0.b32.start [1/2] (short) (narrow) %v201_v10, 8 }
 0x18f   :  { %211 = vxpose.xlu0.b32.end [2/2] (short) (narrow) %v1360_v9, 8 }
 0x207   :  { %v226_v15 = vpop.trf.xlu0 }
 0x208   :  { %v256_v16 = vrot.slane %v226_v15, %v255_v13  ;;  %v245_v17 = vrot.slane %v226_v15, %v244_v14  ;;  %v267_v19 = vrot.slane %v226_v15, %v266_v18  ;;  %v278_v21 = vrot.slane %v226_v15, %v277_v20 }
 0x209   :  { %v293_v26 = vrot.slane %v226_v15, %v292_v25 }
 0x20a   :  { %258 = vbcast.lane.b32.xlu0 %v256_v16, 256  ;;  %247 = vbcast.lane.b32.xlu1 %v245_v17, 256 }
 0x20b   :  { %v294_v27 = vcombine.high %v293_v26, %v293_v26  ;;  %v301_v32 = vrot.slane %v293_v26, %v292_v25 }
 0x20d   :  { %v308_v30 = vrot.slane %v294_v27, %v292_v25  ;;  %v314_v36 = vrot.slane %v301_v32, %v1618_v31  ;;  %v309_v49 = vcombine.high %v301_v32, %v301_v32 }
 0x20e   :  { %251 = vbcast.lane.b32.xlu1 %v245_v17, 264 }
 0x20f   :  { %v318_v35 = vrot.slane %v308_v30, %v1618_v31  ;;  %v322_v56 = vrot.slane %v309_v49, %v1618_v31  ;;  %v310_v3 = vcombine.high %v308_v30, %v308_v30 }
 0x211   :  { %v326_v11 = vrot.slane %v310_v3, %v1618_v31 }
 0x212   :  { %262 = vbcast.lane.b32.xlu1 %v256_v16, 264 }
 0x216   :  { %269 = vbcast.lane.b32.xlu1 %v267_v19, 256 }
 0x21a   :  { %273 = vbcast.lane.b32.xlu1 %v267_v19, 264 }
 0x21e   :  { %280 = vbcast.lane.b32.xlu1 %v278_v21, 256 }
 0x222   :  { %284 = vbcast.lane.b32.xlu1 %v278_v21, 264 }
 0x27c   :  { %v259_v37 = vpop.permute.xlu0 %258  ;;  %v248_v38 = vpop.permute.xlu1 %247 }
 0x27d   :  { %v333_v39 = vadd.f32 %v318_v35, %v259_v37  ;;  %v331_v40 = vadd.f32 %v314_v36, %v248_v38 }
 0x27f   :  { %v349_v42 = vmul.f32 0.2, %v333_v39  ;;  %v347_v43 = vmul.f32 0.2, %v331_v40  ;;  %vm339_vm3 = vcmp.gt.f32.partialorder %v331_v40, 0.0  ;;  %vm341_vm4 = vcmp.gt.f32.partialorder %v333_v39, 0.0 }
 0x280   :  { %v252_v44 = vpop.permute.xlu1 %251 }
 0x281   :  { %v332_v45 = vadd.f32 %v314_v36, %v252_v44  ;;  %v355_v46 = vsel %vm339_vm3, %v331_v40, %v347_v43  ;;  %v357_v47 = vsel %vm341_vm4, %v333_v39, %v349_v42 }
 0x282   :  { %v367_v48 = vsel %vm36_vm2, %v355_v46, -1e+30  ;;  %v369_v53 = vsel %vm36_vm2, %v357_v47, -1e+30 }
 0x283   :  { %v348_v50 = vmul.f32 0.2, %v332_v45  ;;  %v376_v51 = vsel %vm375_vm5, %v367_v48, -inf  ;;  %vm340_vm7 = vcmp.gt.f32.partialorder %v332_v45, 0.0  ;;  %v382_v60 = vsel %vm375_vm5, %v369_v53, -inf }
 0x284   :  { %v263_v52 = vpop.permute.xlu1 %262  ;;  %377 = vmax.xlane.f32.xlu1 %v376_v51 }
 0x285   :  { %v334_v54 = vadd.f32 %v318_v35, %v263_v52  ;;  %v356_v55 = vsel %vm340_vm7, %v332_v45, %v348_v50 }
 0x286   :  { %v368_v57 = vsel %vm37_vm6, %v356_v55, -1e+30 }
 0x287   :  { %v350_v58 = vmul.f32 0.2, %v334_v54  ;;  %v379_v59 = vsel %vm375_vm5, %v368_v57, -inf  ;;  %vm342_vm8 = vcmp.gt.f32.partialorder %v334_v54, 0.0 }
 0x288   :  { %v270_v61 = vpop.permute.xlu1 %269  ;;  %380 = vmax.xlane.f32.xlu0 %v379_v59  ;;  %383 = vmax.xlane.f32.xlu1 %v382_v60 }
 0x289   :  { %v335_v62 = vadd.f32 %v322_v56, %v270_v61  ;;  %v358_v63 = vsel %vm342_vm8, %v334_v54, %v350_v58 }
 0x28a   :  { %v370_v0 = vsel %vm37_vm6, %v358_v63, -1e+30 }
 0x28b   :  { %v351_v1 = vmul.f32 0.2, %v335_v62  ;;  %v385_v2 = vsel %vm375_vm5, %v370_v0, -inf  ;;  %vm343_vm9 = vcmp.gt.f32.partialorder %v335_v62, 0.0 }
 0x28c   :  { %v274_v4 = vpop.permute.xlu1 %273  ;;  %386 = vmax.xlane.f32.xlu1 %v385_v2 }
 0x28d   :  { %v336_v5 = vadd.f32 %v322_v56, %v274_v4  ;;  %v359_v6 = vsel %vm343_vm9, %v335_v62, %v351_v1 }
 0x28e   :  { %v371_v9 = vsel %vm36_vm2, %v359_v6, -1e+30 }
 0x28f   :  { %v352_v10 = vmul.f32 0.2, %v336_v5  ;;  %v388_v13 = vsel %vm375_vm5, %v371_v9, -inf  ;;  %vm344_vm10 = vcmp.gt.f32.partialorder %v336_v5, 0.0 }
 0x290   :  { %v281_v14 = vpop.permute.xlu1 %280  ;;  %389 = vmax.xlane.f32.xlu1 %v388_v13 }
 0x291   :  { %v337_v15 = vadd.f32 %v326_v11, %v281_v14  ;;  %v360_v16 = vsel %vm344_vm10, %v336_v5, %v352_v10 }
 0x292   :  { %v372_v17 = vsel %vm37_vm6, %v360_v16, -1e+30 }
 0x293   :  { %v353_v18 = vmul.f32 0.2, %v337_v15  ;;  %v391_v19 = vsel %vm375_vm5, %v372_v17, -inf  ;;  %vm345_vm11 = vcmp.gt.f32.partialorder %v337_v15, 0.0 }
 0x294   :  { %v285_v20 = vpop.permute.xlu1 %284  ;;  %392 = vmax.xlane.f32.xlu1 %v391_v19 }
 0x295   :  { %v338_v21 = vadd.f32 %v326_v11, %v285_v20  ;;  %v361_v22 = vsel %vm345_vm11, %v337_v15, %v353_v18 }
 0x296   :  { %v373_v23 = vsel %vm36_vm2, %v361_v22, -1e+30 }
 0x297   :  { %v354_v24 = vmul.f32 0.2, %v338_v21  ;;  %v394_v25 = vsel %vm375_vm5, %v373_v23, -inf  ;;  %vm346_vm12 = vcmp.gt.f32.partialorder %v338_v21, 0.0 }
 0x298   :  { %395 = vmax.xlane.f32.xlu0 %v394_v25 }
 0x299   :  { %v362_v26 = vsel %vm346_vm12, %v338_v21, %v354_v24 }
 0x29a   :  { %v1653_v27 = vsel %vm37_vm6, %v362_v26, -1e+30 }
 0x29b   :  { %v397_v28 = vsel %vm375_vm5, %v1653_v27, -inf }
 0x29c   :  { %398 = vmax.xlane.f32.xlu1 %v397_v28 }
 0x30d   :  { %v378_v29 = vpop.xlane.xlu1 %377 }
 0x30e   :  { %v400_v30 = vsub.f32 %v367_v48, %v378_v29 }
 0x310   :  { %v408_v32 = vmul.f32 1.442695, %v400_v30 }
 0x311   :  { %v381_v34 = vpop.xlane.xlu0 %380  ;;  %v384_v35 = vpop.xlane.xlu1 %383 }
 0x312   :  { %1452 = vpow2.f32 %v408_v32  ;;  %v401_v36 = vsub.f32 %v368_v57, %v381_v34  ;;  %v402_v37 = vsub.f32 %v369_v53, %v384_v35 }
 0x314   :  { %v410_v38 = vmul.f32 1.442695, %v401_v36  ;;  %v412_v39 = vmul.f32 1.442695, %v402_v37 }
 0x315   :  { %v387_v40 = vpop.xlane.xlu1 %386 }
 0x316   :  { %1454 = vpow2.f32 %v410_v38  ;;  %v403_v42 = vsub.f32 %v370_v0, %v387_v40 }
 0x317   :  { %1456 = vpow2.f32 %v412_v39 }
 0x318   :  { %v414_v43 = vmul.f32 1.442695, %v403_v42 }
 0x319   :  { %v390_v44 = vpop.xlane.xlu1 %389 }
 0x31a   :  { %1458 = vpow2.f32 %v414_v43  ;;  %v404_v45 = vsub.f32 %v371_v9, %v390_v44 }
 0x31c   :  { %v416_v46 = vmul.f32 1.442695, %v404_v45 }
 0x31d   :  { %v393_v47 = vpop.xlane.xlu1 %392 }
 0x31e   :  { %1460 = vpow2.f32 %v416_v46  ;;  %v405_v48 = vsub.f32 %v372_v17, %v393_v47 }
 0x31f   :  { %v1453_v49 = vpop.eup %1452 }
 0x320   :  { %v418_v50 = vmul.f32 1.442695, %v405_v48  ;;  %v1659_v51 = vsel %vm36_vm2, %v1453_v49, 0.0 }
 0x321   :  { %v396_v52 = vpop.xlane.xlu0 %395  ;;  %v432_v53 = vsel %vm375_vm5, %v1659_v51, 0.0 }
 0x322   :  { %1462 = vpow2.f32 %v418_v50  ;;  %v406_v54 = vsub.f32 %v373_v23, %v396_v52  ;;  %433 = vadd.xlane.f32.xlu0 %v432_v53 }
 0x323   :  { %v1455_v55 = vpop.eup %1454 }
 0x324   :  { %v1457_v56 = vpop.eup %1456  ;;  %v420_v57 = vmul.f32 1.442695, %v406_v54  ;;  %v1665_v58 = vsel %vm37_vm6, %v1455_v55, 0.0 }
 0x325   :  { %v435_v59 = vsel %vm375_vm5, %v1665_v58, 0.0  ;;  %v1671_v60 = vsel %vm36_vm2, %v1457_v56, 0.0  ;;  %v399_v13 = vpop.xlane.xlu1 %398 }
 0x326   :  { %1464 = vpow2.f32 %v420_v57  ;;  %436 = vadd.xlane.f32.xlu1 %v435_v59  ;;  %v438_v61 = vsel %vm375_vm5, %v1671_v60, 0.0  ;;  %v407_v14 = vsub.f32 %v1653_v27, %v399_v13 }
 0x327   :  { %v1459_v62 = vpop.eup %1458  ;;  %439 = vadd.xlane.f32.xlu0 %v438_v61 }
 0x328   :  { %v1677_v63 = vsel %vm37_vm6, %v1459_v62, 0.0  ;;  %v422_v15 = vmul.f32 1.442695, %v407_v14 }
 0x329   :  { %v441_v0 = vsel %vm375_vm5, %v1677_v63, 0.0 }
 0x32a   :  { %442 = vadd.xlane.f32.xlu1 %v441_v0  ;;  %1466 = vpow2.f32 %v422_v15 }
 0x32b   :  { %v1461_v1 = vpop.eup %1460 }
 0x32c   :  { %v1683_v2 = vsel %vm36_vm2, %v1461_v1, 0.0 }
 0x32d   :  { %v444_v3 = vsel %vm375_vm5, %v1683_v2, 0.0 }
 0x32e   :  { %445 = vadd.xlane.f32.xlu0 %v444_v3 }
 0x32f   :  { %v1463_v4 = vpop.eup %1462 }
 0x330   :  { %v1689_v5 = vsel %vm37_vm6, %v1463_v4, 0.0 }
 0x331   :  { %v447_v6 = vsel %vm375_vm5, %v1689_v5, 0.0 }
 0x332   :  { %448 = vadd.xlane.f32.xlu1 %v447_v6 }
 0x333   :  { %v1465_v9 = vpop.eup %1464 }
 0x334   :  { %v1695_v10 = vsel %vm36_vm2, %v1465_v9, 0.0 }
 0x335   :  { %v450_v11 = vsel %vm375_vm5, %v1695_v10, 0.0 }
 0x336   :  { %451 = vadd.xlane.f32.xlu0 %v450_v11 }
 0x337   :  { %v1467_v16 = vpop.eup %1466 }
 0x338   :  { %v1707_v17 = vsel %vm37_vm6, %v1467_v16, 0.0 }
 0x339   :  { %v453_v18 = vsel %vm375_vm5, %v1707_v17, 0.0 }
 0x343   :  { %504 = vrot.lane.b32.xlu1 %v1598_v8, %s1519_s1 }
 0x347   :  { %512 = vrot.lane.b32.xlu1 %v1595_v7, %s1520_s18 }
 0x34b   :  { %518 = vrot.lane.b32.xlu1 %v1595_v7, %s1521_s19 }
 0x34c   :  { %506 = vrot.lane.b32.xlu0 %v1595_v7, %s1519_s1 }
 0x350   :  { %510 = vrot.lane.b32.xlu0 %v1598_v8, %s1520_s18 }
 0x36f   :  { %454 = vadd.xlane.f32.xlu1 %v453_v18 }
 0x380   :  { %516 = vrot.lane.b32.xlu1 %v1598_v8, %s1521_s19 }
 0x3ab   :  { %v434_v19 = vpop.xlane.xlu0 %433 }
 0x3ac   :  { %v456_v7 = vmax.f32 %v434_v19, 1e-20 }
 0x3ae   :  { %1468 = vrcp.f32 %v456_v7 }
 0x3af   :  { %v437_v20 = vpop.xlane.xlu1 %436 }
 0x3b0   :  { %v440_v21 = vpop.xlane.xlu0 %439  ;;  %v457_v22 = vmax.f32 %v437_v20, 1e-20 }
 0x3b1   :  { %v458_v23 = vmax.f32 %v440_v21, 1e-20 }
 0x3b2   :  { %1470 = vrcp.f32 %v457_v22 }
 0x3b3   :  { %1472 = vrcp.f32 %v458_v23  ;;  %v443_v24 = vpop.xlane.xlu1 %442 }
 0x3b4   :  { %v459_v25 = vmax.f32 %v443_v24, 1e-20 }
 0x3b6   :  { %1474 = vrcp.f32 %v459_v25 }
 0x3b7   :  { %v446_v26 = vpop.xlane.xlu0 %445 }
 0x3b8   :  { %v460_v27 = vmax.f32 %v446_v26, 1e-20 }
 0x3ba   :  { %1476 = vrcp.f32 %v460_v27 }
 0x3bb   :  { %v1469_v28 = vpop.eup %1468  ;;  %v449_v29 = vpop.xlane.xlu1 %448 }
 0x3bc   :  { %v472_v30 = vmul.f32 %v1469_v28, %v456_v7  ;;  %v461_v32 = vmax.f32 %v449_v29, 1e-20 }
 0x3be   :  { %v480_v8 = vsub.f32 2.0, %v472_v30  ;;  %1478 = vrcp.f32 %v461_v32  ;;  %v897_v30 = vld [vmem:[%s1833_s5] sm:$0xff] }
 0x3bf   :  { %v1471_v34 = vpop.eup %1470  ;;  %v452_v35 = vpop.xlane.xlu0 %451 }
 0x3c0   :  { %v505_v36 = vpop.permute.xlu1 %504  ;;  %v1473_v37 = vpop.eup %1472  ;;  %v488_v38 = vmul.f32 %v1469_v28, %v480_v8  ;;  %v473_v39 = vmul.f32 %v1471_v34, %v457_v22  ;;  %v462_v40 = vmax.f32 %v452_v35, 1e-20  ;;  %v898_v28 = vld [vmem:[%s1833_s5 + $0x8] sm:$0xff]  ;;  %v916_v8 = vld [vmem:[%s1834_s6 + $0x78] sm:$0xff] }
 0x3c1   :  { %v474_v42 = vmul.f32 %v1473_v37, %v458_v23  ;;  %v914_v35 = vld [vmem:[%s1834_s6 + $0x68] sm:$0xff] }
 0x3c2   :  { %v496_v43 = vmul.f32 %v488_v38, %v1659_v51  ;;  %v481_v44 = vsub.f32 2.0, %v473_v39  ;;  %1480 = vrcp.f32 %v462_v40  ;;  %v911_v38 = vld [vmem:[%s1834_s6 + $0x50] sm:$0xff]  ;;  %v910_v39 = vld [vmem:[%s1834_s6 + $0x48] sm:$0xff] }
 0x3c3   :  { %v1475_v45 = vpop.eup %1474  ;;  %v482_v46 = vsub.f32 2.0, %v474_v42  ;;  %v507_v47 = vpop.permute.xlu0 %506  ;;  %v908_v42 = vld [vmem:[%s1834_s6 + $0x38] sm:$0xff] }
 0x3c4   :  { %v513_v48 = vpop.permute.xlu1 %512  ;;  %v489_v49 = vmul.f32 %v1471_v34, %v481_v44  ;;  %v475_v50 = vmul.f32 %v1475_v45, %v459_v25  ;;  %1365 = vmatprep.mubr.msk.f32.mxu1 %vm375_vm5, %v496_v43  ;;  %1368 = vmatprep.subr.mxu1 %v507_v47  ;;  %v915_v34 = vld [vmem:[%s1834_s6 + $0x70] sm:$0xff]  ;;  %v906_v44 = vld [vmem:[%s1834_s6 + $0x28] sm:$0xff] }
 0x3c5   :  { %v490_v52 = vmul.f32 %v1473_v37, %v482_v46  ;;  %v912_v37 = vld [vmem:[%s1834_s6 + $0x58] sm:$0xff]  ;;  %v907_v43 = vld [vmem:[%s1834_s6 + $0x30] sm:$0xff] }
 0x3c6   :  { %v497_v53 = vmul.f32 %v489_v49, %v1665_v58  ;;  %v483_v54 = vsub.f32 2.0, %v475_v50  ;;  %v904_v46 = vld [vmem:[%s1834_s6 + $0x18] sm:$0xff] }
 0x3c7   :  { %v1477_v55 = vpop.eup %1476  ;;  %v498_v56 = vmul.f32 %v490_v52, %v1671_v60  ;;  %v511_v60 = vpop.permute.xlu0 %510 }
 0x3c8   :  { %v519_v57 = vpop.permute.xlu1 %518  ;;  %v491_v51 = vmul.f32 %v1475_v45, %v483_v54  ;;  %v476_v59 = vmul.f32 %v1477_v55, %v460_v27  ;;  %1366 = vmatmul.mubr.msk.f32.vlgmr.msra.gmra.mxu1 %vm375_vm5, %v497_v53  ;;  %v899_v27 = vld [vmem:[%s1833_s5 + $0x10] sm:$0xff]  ;;  %v905_v45 = vld [vmem:[%s1834_s6 + $0x20] sm:$0xff] }
 0x3c9   :  { %1382 = vmatprep.subr.mxu0 %v519_v57  ;;  %1369 = vmatpush3.msra.mxu1 %v507_v47  ;;  %v903_v47 = vld [vmem:[%s1834_s6 + $0x10] sm:$0xff]  ;;  %v1280_v54 = vld [vmem:[%s1832_s4] ss:$0 sm:$0xff] }
 0x3ca   :  { %1372 = vmatprep.mubr.msk.f32.mxu1 %vm375_vm5, %v498_v56  ;;  %v499_v61 = vmul.f32 %v491_v51, %v1677_v63  ;;  %v484_v62 = vsub.f32 2.0, %v476_v59  ;;  %1370 = vmatprep.subr.mxu1 %v505_v36 }
 0x3cb   :  { %1383 = vmatpush3.msra.mxu0 %v519_v57  ;;  %v1479_v0 = vpop.eup %1478  ;;  %1371 = vmatpush3.msra.mxu1 %v505_v36  ;;  %v913_v36 = vld [vmem:[%s1834_s6 + $0x60] sm:$0xff] }
 0x3cc   :  { %v492_v58 = vmul.f32 %v1477_v55, %v484_v62  ;;  %v477_v1 = vmul.f32 %v1479_v0, %v461_v32  ;;  %1375 = vmatprep.subr.mxu1 %v513_v48  ;;  %1373 = vmatmul.mubr.msk.f32.vlgmr.msra.gmra.mxu1 %vm375_vm5, %v499_v61 }
 0x3cd   :  { %1376 = vmatpush3.msra.mxu1 %v513_v48 }
 0x3ce   :  { %v500_v3 = vmul.f32 %v492_v58, %v1683_v2  ;;  %v485_v4 = vsub.f32 2.0, %v477_v1  ;;  %1377 = vmatprep.subr.mxu1 %v511_v60 }
 0x3cf   :  { %v1481_v6 = vpop.eup %1480  ;;  %1378 = vmatpush3.msra.mxu1 %v511_v60 }
 0x3d0   :  { %v493_v9 = vmul.f32 %v1479_v0, %v485_v4  ;;  %v478_v63 = vmul.f32 %v1481_v6, %v462_v40  ;;  %1379 = vmatprep.mubr.msk.f32.mxu1 %vm375_vm5, %v500_v3  ;;  %v909_v40 = vld [vmem:[%s1834_s6 + $0x40] sm:$0xff] }
 0x3d2   :  { %v501_v11 = vmul.f32 %v493_v9, %v1689_v5  ;;  %v486_v13 = vsub.f32 2.0, %v478_v63 }
 0x3d4   :  { %1380 = vmatmul.mubr.msk.f32.vlgmr.msra.gmra.mxu1 %vm375_vm5, %v501_v11  ;;  %v494_v14 = vmul.f32 %v1481_v6, %v486_v13 }
 0x3d6   :  { %v502_v15 = vmul.f32 %v494_v14, %v1695_v10 }
 0x3d8   :  { %1386 = vmatprep.mubr.msk.f32.mxu0 %vm375_vm5, %v502_v15  ;;  %v902_v15 = vld [vmem:[%s1834_s6 + $0x8] sm:$0xff] }
 0x3f8   :  { %v455_v16 = vpop.xlane.xlu1 %454 }
 0x3f9   :  { %v463_v2 = vmax.f32 %v455_v16, 1e-20  ;;  %v901_v16 = vld [vmem:[%s1834_s6] sm:$0xff] }
 0x3fb   :  { %1482 = vrcp.f32 %v463_v2 }
 0x3fc   :  { %v517_v18 = vpop.permute.xlu1 %516 }
 0x3fd   :  { %1384 = vmatprep.subr.mxu0 %v517_v18 }
 0x3fe   :  { %1385 = vmatpush3.msra.mxu0 %v517_v18 }
 0x3ff   :  { %1400 = vmatprep.subr.mxu0 %v916_v8 }
 0x408   :  { %v1483_v19 = vpop.eup %1482 }
 0x409   :  { %v479_v7 = vmul.f32 %v1483_v19, %v463_v2 }
 0x40b   :  { %v487_v20 = vsub.f32 2.0, %v479_v7 }
 0x40d   :  { %v495_v21 = vmul.f32 %v1483_v19, %v487_v20  ;;  %v1108_v20 = vsub.s32 1, %v1607_v12 }
 0x40f   :  { %v503_v5 = vmul.f32 %v495_v21, %v1707_v17  ;;  %v900_v17 = vld [vmem:[%s1833_s5 + $0x18] sm:$0xff] }
 0x410   :  { %1389 = vmatprep.subr.mxu1 %v900_v17 }
 0x411   :  { %1387 = vmatmul.mubr.msk.f32.vlgmr.msra.gmra.mxu0 %vm375_vm5, %v503_v5  ;;  %1390 = vmatpush3.msra.mxu1 %v900_v17 }
 0x412   :  { %1391 = vmatprep.subr.mxu1 %v899_v27  ;;  %1401 = vmatpush3.msra.mxu0 %v916_v8 }
 0x413   :  { %1392 = vmatpush3.msra.mxu1 %v899_v27  ;;  %1402 = vmatprep.subr.mxu0 %v915_v34 }
 0x414   :  { %1393 = vmatprep.subr.mxu1 %v898_v28  ;;  %1403 = vmatpush3.msra.mxu0 %v915_v34 }
 0x415   :  { %1394 = vmatpush3.msra.mxu1 %v898_v28  ;;  %1404 = vmatprep.subr.mxu0 %v914_v35 }
 0x416   :  { %1395 = vmatprep.subr.mxu1 %v897_v30  ;;  %1405 = vmatpush3.msra.mxu0 %v914_v35 }
 0x417   :  { %1396 = vmatpush3.msra.mxu1 %v897_v30  ;;  %1406 = vmatprep.subr.mxu0 %v913_v36 }
 0x418   :  { %1407 = vmatpush3.msra.mxu0 %v913_v36 }
 0x419   :  { %1408 = vmatprep.subr.mxu0 %v912_v37 }
 0x41a   :  { %1409 = vmatpush3.msra.mxu0 %v912_v37 }
 0x41b   :  { %1410 = vmatprep.subr.mxu0 %v911_v38 }
 0x41c   :  { %1411 = vmatpush3.msra.mxu0 %v911_v38 }
 0x41d   :  { %1412 = vmatprep.subr.mxu0 %v910_v39 }
 0x41e   :  { %1413 = vmatpush3.msra.mxu0 %v910_v39 }
 0x41f   :  { %1414 = vmatprep.subr.mxu0 %v909_v40 }
 0x420   :  { %1415 = vmatpush3.msra.mxu0 %v909_v40 }
 0x421   :  { %1416 = vmatprep.subr.mxu0 %v908_v42 }
 0x422   :  { %1417 = vmatpush3.msra.mxu0 %v908_v42 }
 0x423   :  { %1418 = vmatprep.subr.mxu0 %v907_v43 }
 0x424   :  { %1419 = vmatpush3.msra.mxu0 %v907_v43 }
 0x425   :  { %1420 = vmatprep.subr.mxu0 %v906_v44 }
 0x426   :  { %1421 = vmatpush3.msra.mxu0 %v906_v44 }
 0x427   :  { %1422 = vmatprep.subr.mxu0 %v905_v45 }
 0x428   :  { %1423 = vmatpush3.msra.mxu0 %v905_v45 }
 0x429   :  { %1424 = vmatprep.subr.mxu0 %v904_v46 }
 0x42a   :  { %1425 = vmatpush3.msra.mxu0 %v904_v46 }
 0x42b   :  { %1426 = vmatprep.subr.mxu0 %v903_v47 }
 0x42c   :  { %1427 = vmatpush3.msra.mxu0 %v903_v47 }
 0x42d   :  { %1428 = vmatprep.subr.mxu0 %v902_v15 }
 0x42e   :  { %1429 = vmatpush3.msra.mxu0 %v902_v15 }
 0x42f   :  { %1430 = vmatprep.subr.mxu0 %v901_v16 }
 0x430   :  { %1431 = vmatpush3.msra.mxu0 %v901_v16 }
 0x488   :  { %v1728_v22 = vpop.f32.mrf.mxu1 }
 0x48a   :  { %v1730_v23 = vpop.f32.mrf.mxu1 }
 0x48c   :  { %v1374_v10 = vpop.f32.mrf.mxu1 }
 0x48d   :  { %850 = vrot.lane.b32.xlu1 %v1374_v10, %s1522_s20 }
 0x48e   :  { %v675_v24 = vpop.f32.mrf.mxu1 }
 0x48f   :  { %848 = vrot.lane.b32.xlu0 %v675_v24, %s1522_s20 }
 0x494   :  { %v1381_v25 = vpop.f32.mrf.mxu1 }
 0x495   :  { %858 = vrot.lane.b32.xlu1 %v1381_v25, %s1523_s21 }
 0x496   :  { %v756_v26 = vpop.f32.mrf.mxu1 }
 0x497   :  { %856 = vrot.lane.b32.xlu0 %v756_v26, %s1523_s21 }
 0x4d1   :  { %v1388_v29 = vpop.f32.mrf.mxu0 }
 0x4d2   :  { %866 = vrot.lane.b32.xlu1 %v1388_v29, %s1524_s28 }
 0x4d3   :  { %v837_v32 = vpop.f32.mrf.mxu0 }
 0x4d4   :  { %864 = vrot.lane.b32.xlu0 %v837_v32, %s1524_s28 }
 0x4ff   :  { %v851_v48 = vpop.permute.xlu1 %850 }
 0x500   :  { %v871_v53 = vsel %vm46_vm0, %v1728_v22, %v851_v48 }
 0x501   :  { %v849_v49 = vpop.permute.xlu0 %848 }
 0x502   :  { %v870_v57 = vsel %vm46_vm0, %v1730_v23, %v849_v49 }
 0x507   :  { %v859_v50 = vpop.permute.xlu1 %858 }
 0x508   :  { %v873_v55 = vsel %vm375_vm5, %v871_v53, %v859_v50 }
 0x509   :  { %v857_v52 = vpop.permute.xlu0 %856 }
 0x50a   :  { %v872_v59 = vsel %vm375_vm5, %v870_v57, %v857_v52 }
 0x544   :  { %v867_v56 = vpop.permute.xlu1 %866 }
 0x545   :  { %v876_v51 = vsel %vm874_vm13, %v873_v55, %v867_v56 }
 0x546   :  { %v884_v61 = vadd.f32 %v1280_v54, %v876_v51  ;;  %v865_v62 = vpop.permute.xlu0 %864  ;;  %v1285_v51 = vld [vmem:[%s1835_s7] ss:$0 sm:$0xff] }
 0x547   :  { %v875_v0 = vsel %vm874_vm13, %v872_v59, %v865_v62 }
 0x548   :  { %v888_v58 = vmin.f32 %v884_v61, 0.0  ;;  %v883_v1 = vadd.f32 %v1280_v54, %v875_v0  ;;  %vm886_vm15 = vcmp.gt.f32.partialorder %v884_v61, 0.0 }
 0x54a   :  { %v891_v60 = vmul.f32 1.442695, %v888_v58  ;;  %v887_v3 = vmin.f32 %v883_v1, 0.0  ;;  %vm885_vm14 = vcmp.gt.f32.partialorder %v883_v1, 0.0 }
 0x54c   :  { %1484 = vpow2.f32 %v891_v60  ;;  %v889_v4 = vmul.f32 1.442695, %v887_v3 }
 0x54e   :  { %1486 = vpow2.f32 %v889_v4 }
 0x559   :  { %v1485_v6 = vpop.eup %1484 }
 0x55a   :  { %v1282_v63 = vadd.f32 -1.0, %v1485_v6 }
 0x55b   :  { %v1487_v9 = vpop.eup %1486 }
 0x55c   :  { %v1281_v11 = vadd.f32 -1.0, %v1487_v9  ;;  %v896_v14 = vsel %vm886_vm15, %v884_v61, %v1282_v63 }
 0x55e   :  { %v895_v13 = vsel %vm885_vm14, %v883_v1, %v1281_v11 }
 0x55f   :  { %1397 = vmatprep.mubr.msk.f32.mxu1 %vm128_vm1, %v895_v13 }
 0x560   :  { %1398 = vmatmul.mubr.msk.f32.vlgmr.msra.gmra.mxu1 %vm128_vm1, %v896_v14 }
 0x620   :  { %v1399_v2 = vpop.f32.mrf.mxu1 }
 0x621   :  { %1435 = vmatprep.subr.mxu1 %v1399_v2 }
 0x622   :  { %v990_v18 = vpop.f32.mrf.mxu1  ;;  %1436 = vmatpush3.msra.mxu1 %v1399_v2 }
 0x623   :  { %1432 = vmatprep.mubr.f32.mxu0 %v990_v18  ;;  %1437 = vmatprep.subr.mxu1 %v990_v18 }
 0x624   :  { %1433 = vmatmul.mubr.f32.vlgmr.msra.gmra.mxu0 %v1399_v2  ;;  %1438 = vmatpush3.msra.mxu1 %v990_v18 }
 0x6e4   :  { %v1434_v19 = vpop.f32.mrf.mxu0 }
 0x6e6   :  { %v1065_v7 = vpop.f32.mrf.mxu0 }
 0x6e7   :  { %1074 = vxpose.xlu0.b32.start [1/2] (short) (narrow) %v1065_v7, 8 }
 0x6eb   :  { %1075 = vxpose.xlu0.b32.end [2/2] (short) (narrow) %v1434_v19, 8 }
 0x763   :  { %v1090_v21 = vpop.trf.xlu0 }
 0x764   :  { %v1109_v5 = vrot.slane %v1090_v21, %v1108_v20  ;;  %v1120_v22 = vrot.slane %v1090_v21, %v1618_v31 }
 0x766   :  { %1111 = vbcast.lane.b32.xlu1 %v1109_v5, 256 }
 0x76a   :  { %1115 = vbcast.lane.b32.xlu1 %v1109_v5, 264 }
 0x7d8   :  { %v1112_v23 = vpop.permute.xlu1 %1111 }
 0x7d9   :  { %v1121_v10 = vadd.f32 %v1120_v22, %v1112_v23 }
 0x7db   :  { %v1125_v24 = vmul.f32 0.2, %v1121_v10  ;;  %vm1123_vm0 = vcmp.gt.f32.partialorder %v1121_v10, 0.0 }
 0x7dc   :  { %v1116_v25 = vpop.permute.xlu1 %1115 }
 0x7dd   :  { %v1122_v26 = vadd.f32 %v1120_v22, %v1116_v25  ;;  %v1127_v17 = vsel %vm1123_vm0, %v1121_v10, %v1125_v24 }
 0x7de   :  { %v1129_v27 = vsel %vm36_vm2, %v1127_v17, -1e+30 }
 0x7df   :  { %v1126_v28 = vmul.f32 0.2, %v1122_v26  ;;  %v1131_v29 = vsel %vm375_vm5, %v1129_v27, -inf  ;;  %vm1124_vm1 = vcmp.gt.f32.partialorder %v1122_v26, 0.0 }
 0x7e0   :  { %1132 = vmax.xlane.f32.xlu1 %v1131_v29 }
 0x7e1   :  { %v1128_v12 = vsel %vm1124_vm1, %v1122_v26, %v1126_v28 }
 0x7e2   :  { %v1130_v30 = vsel %vm37_vm6, %v1128_v12, -1e+30 }
 0x7e3   :  { %v1134_v31 = vsel %vm375_vm5, %v1130_v30, -inf }
 0x7e4   :  { %1135 = vmax.xlane.f32.xlu0 %v1134_v31 }
 0x869   :  { %v1133_v32 = vpop.xlane.xlu1 %1132 }
 0x86a   :  { %v1137_v8 = vsub.f32 %v1129_v27, %v1133_v32 }
 0x86c   :  { %v1139_v34 = vmul.f32 1.442695, %v1137_v8 }
 0x86d   :  { %v1136_v35 = vpop.xlane.xlu0 %1135 }
 0x86e   :  { %1488 = vpow2.f32 %v1139_v34  ;;  %v1138_v36 = vsub.f32 %v1130_v30, %v1136_v35 }
 0x870   :  { %v1141_v37 = vmul.f32 1.442695, %v1138_v36 }
 0x872   :  { %1490 = vpow2.f32 %v1141_v37 }
 0x87b   :  { %v1489_v38 = vpop.eup %1488 }
 0x87c   :  { %v1143_v39 = vsel %vm36_vm2, %v1489_v38, 0.0 }
 0x87d   :  { %v1145_v40 = vsel %vm375_vm5, %v1143_v39, 0.0 }
 0x87e   :  { %1146 = vadd.xlane.f32.xlu1 %v1145_v40 }
 0x87f   :  { %v1491_v42 = vpop.eup %1490 }
 0x880   :  { %v1144_v43 = vsel %vm37_vm6, %v1491_v42, 0.0 }
 0x881   :  { %v1148_v44 = vsel %vm375_vm5, %v1144_v43, 0.0 }
 0x882   :  { %1149 = vadd.xlane.f32.xlu1 %v1148_v44 }
 0x907   :  { %v1147_v45 = vpop.xlane.xlu1 %1146 }
 0x908   :  { %v1151_v46 = vmax.f32 %v1147_v45, 1e-20 }
 0x90a   :  { %1492 = vrcp.f32 %v1151_v46 }
 0x90b   :  { %v1150_v47 = vpop.xlane.xlu1 %1149 }
 0x90c   :  { %v1152_v48 = vmax.f32 %v1150_v47, 1e-20 }
 0x90e   :  { %1494 = vrcp.f32 %v1152_v48 }
 0x917   :  { %v1493_v49 = vpop.eup %1492 }
 0x918   :  { %v1155_v50 = vmul.f32 %v1493_v49, %v1151_v46 }
 0x91a   :  { %v1157_v33 = vsub.f32 2.0, %v1155_v50 }
 0x91b   :  { %v1495_v52 = vpop.eup %1494 }
 0x91c   :  { %v1159_v53 = vmul.f32 %v1493_v49, %v1157_v33  ;;  %v1156_v54 = vmul.f32 %v1495_v52, %v1152_v48 }
 0x91e   :  { %v1161_v55 = vmul.f32 %v1159_v53, %v1143_v39  ;;  %v1158_v56 = vsub.f32 2.0, %v1156_v54 }
 0x920   :  { %v1160_v57 = vmul.f32 %v1495_v52, %v1158_v56  ;;  %1439 = vmatprep.mubr.msk.f32.mxu1 %vm375_vm5, %v1161_v55 }
 0x922   :  { %v1162_v41 = vmul.f32 %v1160_v57, %v1144_v43 }
 0x924   :  { %1440 = vmatmul.mubr.msk.f32.vlgmr.msra.gmra.mxu1 %vm375_vm5, %v1162_v41 }
 0x9e4   :  { %v1441_v59 = vpop.f32.mrf.mxu1 }
 0x9e5   :  { %v1247_v61 = vadd.f32 %v1441_v59, %v1285_v51 }
 0x9e6   :  { %v1241_v62 = vpop.f32.mrf.mxu1 }
 0x9e7   :  { %1251 = vst [vmem:[#allocation2 + $0x8] sm:$0xff] %v1247_v61  ;;  %v1242_v0 = vadd.f32 %v1285_v51, %v1241_v62 }
 0x9e9   :  { %1250 = vst [vmem:[#allocation2] sm:$0xff] %v1242_v0 }
 0x9ea   :  { %1507 = shalt.err (!%p1504_p4)
}
 0x9eb   :  { %s1526_s3 = smov 128  }
 0x9ec   :  { %1263 = dma.vmem_to_hbm [thread:$0]  %s1258_s0, 256, %s1836_s8, [#allocation3], %s1526_s3, %s1526_s3, %s1522_s20  }
 0x9ed   :  { %1516 = dma.done.wait [#allocation3], 256  }
 0x9ee   :  { %1517 = vsyncadd [#allocation3], 4294967040 }
 0x9ef   :  { %1267 = vsyncpa [#allocation3], 1 }

</bundles_post_ra>
